<compile_context>
chip_gen: v5e
topology: v5e:2x2
jax: 0.10.0
libtpu: 0.0.40
codegen_flags: <defaults>
</compile_context>

<pallas_src>
import math

import jax
import jax.numpy as jnp
from jax.experimental import pallas as pl
from jax.experimental.pallas import tpu as pltpu

_LANE = 128
# Per-buffer tile target; with double-buffered input + output the kernel uses
# ~4x this, which fits even v5e's 16 MiB default scoped-VMEM budget.
_TILE_BYTES_TARGET = 2 * 1024 * 1024


def _identity_kernel(x_ref, o_ref):
    # View does not change any element values.
    o_ref[...] = x_ref[...]


def _resolve_shape(shape, total):
    """torch.view shape resolution: at most one -1, element count must match."""
    shape = list(shape)
    neg = [i for i, s in enumerate(shape) if s == -1]
    if len(neg) > 1:
        raise ValueError("view: only one dimension can be -1")
    if neg:
        known = math.prod(s for s in shape if s != -1)
        if known == 0 or total % known != 0:
            raise ValueError("view: cannot infer -1 dimension")
        shape[neg[0]] = total // known
    if math.prod(shape) != total:
        raise ValueError("view: shape is invalid for input of this size")
    return tuple(shape)


def _factor_slab(total):
    """Pick (rows, cols) with rows*cols == total and cols a wide 128-multiple."""
    if total == 0 or total % _LANE != 0:
        return None
    for cols in (8192, 4096, 2048, 1024, 512, 256, _LANE):
        if total % cols == 0:
            return total // cols, cols
    return None  # unreachable: _LANE always divides here


def _choose_tile_rows(rows, cols, itemsize):
    max_rows = max(1, _TILE_BYTES_TARGET // (cols * itemsize))
    if rows <= max_rows:
        return rows  # block == full dim along rows: always layout-legal
    # 32-multiple rows keep full-vreg loads/stores for f32 / bf16 / int8.
    return max(32, (max_rows // 32) * 32)


def _pallas_identity(slab, tile_rows):
    rows, cols = slab.shape
    return pl.pallas_call(
        _identity_kernel,
        out_shape=jax.ShapeDtypeStruct((rows, cols), slab.dtype),
        grid=(pl.cdiv(rows, tile_rows),),
        in_specs=[pl.BlockSpec((tile_rows, cols), lambda i: (i, 0))],
        out_specs=pl.BlockSpec((tile_rows, cols), lambda i: (i, 0)),
        input_output_aliases={0: 0},  # output backed by the input buffer
        compiler_params=pltpu.CompilerParams(
            dimension_semantics=("parallel",)),
    )(slab)


def pallas_view(x, *shape):
    """Reproduce torch.Tensor.view(*shape) semantics."""
    total = x.size
    out_shape = _resolve_shape(shape, total)

    factor = _factor_slab(total)
    if factor is None:
        # View is metadata-only; for sizes that cannot be presented as a
        # lane-dense slab without padding, skip the kernel entirely rather
        # than paying pad/concat + slice passes over the data.
        return x.reshape(out_shape)

    rows, cols = factor
    slab = x.reshape(rows, cols)
    tile_rows = _choose_tile_rows(rows, cols, slab.dtype.itemsize)
    out = _pallas_identity(slab, tile_rows)
    return out.reshape(out_shape)


class View:
    """JAX/Pallas analogue of the PyTorch View module."""

    def __init__(self, *shape):
        self.shape = shape

    def __call__(self, x):
        return pallas_view(x, *self.shape)


if __name__ == "__main__":
    key = jax.random.PRNGKey(0)
    # Small NCHW-style input consistent with typical use of View (flatten).
    x = jax.random.normal(key, (2, 4, 16, 16), dtype=jnp.float32)

    ref = x.reshape(2, -1)  # reference computed before the kernel call

    m = View(2, -1)
    y = jax.block_until_ready(m(x))

    assert y.shape == (2, 4 * 16 * 16)
    assert y.dtype == x.dtype
    assert bool(jnp.all(y == ref))

    # Fallback path: total not a multiple of 128 -> pure metadata reshape.
    x2 = jax.random.normal(jax.random.PRNGKey(0), (3, 5, 7), dtype=jnp.float32)
    y2 = jax.block_until_ready(View(-1, 7)(x2))
    assert y2.shape == (15, 7)
    assert bool(jnp.all(y2 == x2.reshape(15, 7)))

    print("KERNEL_OK")
</pallas_src>

<mosaic_0001>
module attributes {stable_mosaic.version = 11 : i64} {
  func.func @_identity_kernel(%arg0: i32, %arg1: memref<1x2048xf32, #tpu.memory_space<vmem>>, %arg2: memref<1x2048xf32, #tpu.memory_space<vmem>>) attributes {dimension_semantics = [#tpu.dimension_semantics<parallel>], iteration_bounds = array<i64: 1>, scalar_prefetch = 0 : i64, scratch_operands = 0 : i64, tpu.core_type = #tpu.core_type<tc>, window_params = [{transform_indices = @transform_0, window_bounds = array<i64: 1, 2048>}, {transform_indices = @transform_1, window_bounds = array<i64: 1, 2048>}]} {
    %c0 = arith.constant 0 : index
    %c0_0 = arith.constant 0 : index
    %0 = vector.load %arg1[%c0, %c0_0] : memref<1x2048xf32, #tpu.memory_space<vmem>>, vector<1x2048xf32>
    %c0_1 = arith.constant 0 : index
    %c0_2 = arith.constant 0 : index
    %1 = vector.load %arg2[%c0_1, %c0_2] : memref<1x2048xf32, #tpu.memory_space<vmem>>, vector<1x2048xf32>
    tpu.vector_store %arg2[%c0_1, %c0_2], %0 {strides = array<i32>} : memref<1x2048xf32, #tpu.memory_space<vmem>>, vector<1x2048xf32>,
    return
  }
  func.func @transform_0(%arg0: i32) -> (i32, i32) {
    %c0_i32 = arith.constant 0 : i32
    %c0_i32_0 = arith.constant 0 : i32
    return %arg0, %c0_i32 : i32, i32
  }
  func.func @transform_1(%arg0: i32) -> (i32, i32) {
    %c0_i32 = arith.constant 0 : i32
    %c0_i32_0 = arith.constant 0 : i32
    return %arg0, %c0_i32 : i32, i32
  }
}

</mosaic_0001>

<bundles_post_ra>
// kernel: tpu_custom_call.1
= control target key start
LH: loop header
LB: loop body
LE: loop exit
PB: predicated region body
PF: predicated region fallthrough
CT: control target
= control target key end

     0   :  { %6 = vsyncpa [#allocation3], 0  ;;  %s116_s0 = inlined_call_operand.hbm [shape: f32[1,2048], index: 0, kind: input, shape index: {}, may-alias: {0,1}]   ;;  %s117_s1 = inlined_call_operand.hbm [shape: f32[1,2048], index: 1, kind: output, shape index: {}, may-alias: {0,1}]  }
   0x1   :  { %7 = vsyncpa [#allocation4], 0  ;;  %s13_s8 = sshll.u32 %s116_s0, 4  ;;  %s98_s9 = smov [#allocation2]   ;;  %s14_s8 = int_to_ptr.hbm [resolvable:$true] %s13_s8 }
   0x2   :  { %s15_s10 = sshll.u32 %s98_s9, 4  ;;  %s16_s10 = int_to_ptr.vmem [resolvable:$true] %s15_s10 }
   0x3   :  { %18 = dma.hbm_to_vmem [thread:$0]  %s14_s8, 256, %s16_s10, [#allocation3]  }
   0x4   :  { %94 = dma.done.wait [#allocation3], 256  }
   0x5   :  { %95 = vsyncadd [#allocation3], 4294967040  ;;  %s99_s11 = smov [#allocation5]   ;;  %s34_s15 = sshll.u32 %s117_s1, 4  ;;  %v23_v0 = vld [vmem:[#allocation2] sm:$0xff]  ;;  %v24_v1 = vld [vmem:[#allocation2 + $0x8] sm:$0xff]  ;;  %s35_s15 = int_to_ptr.hbm [resolvable:$true] %s34_s15 }
   0x6   :  { %s32_s12 = sshll.u32 %s99_s11, 4  ;;  %25 = vst [vmem:[#allocation5] sm:$0xff] %v23_v0  ;;  %s33_s12 = int_to_ptr.vmem [resolvable:$true] %s32_s12 }
   0x7   :  { %26 = vst [vmem:[#allocation5 + $0x8] sm:$0xff] %v24_v1 }
   0x8   :  { %37 = dma.vmem_to_hbm [thread:$0]  %s33_s12, 256, %s35_s15, [#allocation4]  }
   0x9   :  { %96 = dma.done.wait [#allocation4], 256  }
   0xa   :  { %97 = vsyncadd [#allocation4], 4294967040 }
   0xb   :  { %42 = vsyncpa [#allocation3], 1 }
   0xc   :  { %43 = vsyncpa [#allocation4], 1 }

</bundles_post_ra>
